<compile_context>
chip_gen: v6e
topology: v6e:2x2x1
jax: 0.10.0
libtpu: 0.0.40
codegen_flags: <defaults>
</compile_context>

<pallas_src>
from functools import partial

import jax
import jax.numpy as jnp
from jax.experimental import pallas as pl
from jax.experimental.pallas import tpu as pltpu

EMB_DIM = 64           # embedding_dim (PyTorch module default)
ATTN_HIDDEN = 80       # logical hidden width of the attention MLP
ATTN_HIDDEN_PAD = 128  # lane-padded width (zero padding -> numerically exact)
CTR_HIDDEN = 128       # hidden width of the CTR predictor
TOP_K = 100            # SoftSearch default k


def _round_up(x, m):
    return ((x + m - 1) // m) * m


# --------------------------------------------------------------------------
# Kernel 1: SoftSearch cosine-similarity scoring.
# Matches torch.F.cosine_similarity semantics: w12 * rsqrt(max(w1*w2, eps^2)).
# --------------------------------------------------------------------------
def cosine_sim_kernel(cand_ref, ub_ref, sim_ref):
    c = cand_ref[0]                       # (1, D)
    ub = ub_ref[0]                        # (S, D)

    dn = (((1,), (1,)), ((), ()))         # contract the feature (lane) dim
    w12 = jax.lax.dot_general(c, ub, dn,
                              preferred_element_type=jnp.float32)        # (1, S)
    # per-row squared norms of ub as an MXU contraction with a ones row
    sq_ub = jax.lax.dot_general(jnp.ones_like(c), ub * ub, dn,
                                preferred_element_type=jnp.float32)      # (1, S)
    sq_c = jnp.sum(c * c, axis=-1, keepdims=True)                        # (1, 1)

    n12 = jnp.maximum(sq_c * sq_ub, jnp.float32(1e-16))  # eps^2 floor on product
    sim_ref[0] = w12 * jax.lax.rsqrt(n12)                                # (1, S)


def cosine_similarity(cand3d, user_behavior):
    B, S, D = user_behavior.shape
    out = pl.pallas_call(
        cosine_sim_kernel,
        out_shape=jax.ShapeDtypeStruct((B, 1, S), jnp.float32),
        grid_spec=pltpu.PrefetchScalarGridSpec(
            num_scalar_prefetch=0,
            grid=(B,),
            in_specs=[
                pl.BlockSpec((1, 1, D), lambda b: (b, 0, 0)),
                pl.BlockSpec((1, S, D), lambda b: (b, 0, 0)),
            ],
            out_specs=pl.BlockSpec((1, 1, S), lambda b: (b, 0, 0)),
        ),
        compiler_params=pltpu.CompilerParams(
            dimension_semantics=("parallel",)),
    )(cand3d, user_behavior)
    return out.reshape(B, S)


# --------------------------------------------------------------------------
# Kernel 2: InterestExtractor + CTR head, fused (one batch element per step).
# --------------------------------------------------------------------------
def interest_ctr_kernel(cand_ref, sub_ref,
                        w1_ref, b1_ref, w2t_ref, b2_ref,
                        w3_ref, b3_ref, w4_ref, b4_ref,
                        out_ref, *, k_valid):
    c = cand_ref[0]                                    # (1, D)
    sub = sub_ref[0]                                   # (K_pad, D)
    K, D = sub.shape

    # attn_in = [c, s, c-s, c*s]  -> single 4D-deep MXU contraction
    c_exp = jnp.broadcast_to(c, (K, D))
    attn_in = jnp.concatenate([c_exp, sub, c_exp - sub, c_exp * sub], axis=-1)  # (K, 4D)

    h = jnp.dot(attn_in, w1_ref[...], preferred_element_type=jnp.float32) \
        + b1_ref[...]                                  # (K, H_pad)
    h = jnp.maximum(h, 0.0)

    # logits as a lane-dense row: (1, H) @ (K, H)^T -> (1, K)   (MXU, trans_b)
    dn_tb = (((1,), (1,)), ((), ()))
    logits = jax.lax.dot_general(w2t_ref[...], h, dn_tb,
                                 preferred_element_type=jnp.float32) + b2_ref[...]

    # mask the padded positions (>= k_valid) before the softmax
    col = jax.lax.broadcasted_iota(jnp.int32, logits.shape, 1)
    logits = jnp.where(col < k_valid, logits, jnp.float32(-1e30))

    # stable softmax over the retrieved sub-sequence
    m = jnp.max(logits, axis=-1, keepdims=True)
    e = jnp.exp(logits - m)                            # (1, K)
    denom = jnp.sum(e, axis=-1, keepdims=True)         # (1, 1)

    # softmax-weighted sum of behaviors on the MXU: (1, K) @ (K, D) -> (1, D)
    interest = jnp.dot(e, sub, preferred_element_type=jnp.float32) / denom

    # CTR head: single 128-deep matmul on [interest, candidate]
    ctr_in = jnp.concatenate([interest, c], axis=-1)   # (1, 2D)
    h2 = jnp.dot(ctr_in, w3_ref[...], preferred_element_type=jnp.float32) \
        + b3_ref[...]                                  # (1, CTR_HIDDEN)
    h2 = jnp.maximum(h2, 0.0)
    logit = jnp.dot(h2, w4_ref[...], preferred_element_type=jnp.float32) \
        + b4_ref[...]                                  # (1, 1)

    # numerically stable sigmoid (no inf intermediate): sigmoid(x) = 0.5*(tanh(x/2)+1)
    out_ref[0] = 0.5 * (jnp.tanh(0.5 * logit) + 1.0)


def interest_and_ctr(cand3d, sub, params, *, k_valid):
    B, _, D = cand3d.shape
    K_pad = sub.shape[1]
    H = params['w1'].shape[1]
    CH = params['w3'].shape[1]

    def full_spec(shape):
        return pl.BlockSpec(shape, lambda b: (0,) * len(shape))

    flops = B * (2 * K_pad * 4 * D * H        # attention matmul
                 + 2 * K_pad * H              # logits
                 + 2 * K_pad * D              # weighted sum
                 + 2 * 2 * D * CH             # ctr hidden
                 + 2 * CH)                    # ctr logit
    param_bytes = sum(int(p.size) for p in params.values()) * 4
    bytes_accessed = int(cand3d.size) * 4 + int(sub.size) * 4 + param_bytes + B * 4
    cost = pl.CostEstimate(flops=int(flops),
                           transcendentals=int(B * (K_pad + 2)),
                           bytes_accessed=int(bytes_accessed))

    kernel = partial(interest_ctr_kernel, k_valid=k_valid)
    out = pl.pallas_call(
        kernel,
        out_shape=jax.ShapeDtypeStruct((B, 1, 1), jnp.float32),
        grid_spec=pltpu.PrefetchScalarGridSpec(
            num_scalar_prefetch=0,
            grid=(B,),
            in_specs=[
                pl.BlockSpec((1, 1, D), lambda b: (b, 0, 0)),
                pl.BlockSpec((1, K_pad, D), lambda b: (b, 0, 0)),
                full_spec(params['w1'].shape),
                full_spec(params['b1'].shape),
                full_spec(params['w2t'].shape),
                full_spec(params['b2'].shape),
                full_spec(params['w3'].shape),
                full_spec(params['b3'].shape),
                full_spec(params['w4'].shape),
                full_spec(params['b4'].shape),
            ],
            out_specs=pl.BlockSpec((1, 1, 1), lambda b: (b, 0, 0)),
        ),
        compiler_params=pltpu.CompilerParams(
            dimension_semantics=("parallel",)),
        cost_estimate=cost,
    )(cand3d, sub,
      params['w1'], params['b1'], params['w2t'], params['b2'],
      params['w3'], params['b3'], params['w4'], params['b4'])
    return out.reshape(B)


# --------------------------------------------------------------------------
# Full SIMWithCTR forward (soft mode)
# --------------------------------------------------------------------------
def sim_with_ctr_forward(params, candidate, user_behavior, k=TOP_K):
    B, S, D = user_behavior.shape
    cand3d = candidate[:, None, :]                                     # (B, 1, D)

    # SoftSearch stage 1: cosine similarity (Pallas kernel)
    sim = cosine_similarity(cand3d, user_behavior)                     # (B, S)

    # Stage 2: top-k + gather kept in XLA.
    # TODO(synk): sorted top-k / gather has no clean Pallas TPU equivalent.
    # Fetch a lane/sublane-aligned k_pad rows (top_k is sorted descending, so
    # the first k of them are exactly torch.topk(k)); the extra rows are
    # masked out inside the interest kernel.
    k_pad = _round_up(k, 128)
    k_fetch = min(k_pad, S)
    _, topk_idx = jax.lax.top_k(sim, k_fetch)                          # (B, k_fetch)
    sub = jnp.take_along_axis(user_behavior, topk_idx[:, :, None], axis=1)
    if k_fetch < k_pad:
        sub = jnp.pad(sub, ((0, 0), (0, k_pad - k_fetch), (0, 0)))     # (B, k_pad, D)

    # InterestExtractor + CTR predictor, fused Pallas kernel
    return interest_and_ctr(cand3d, sub, params, k_valid=k)            # (B,)


# --------------------------------------------------------------------------
# Deterministic synthetic parameter init (mirrors nn.Linear fan-in uniform),
# with lane-padding of the attention hidden width 80 -> 128 (exact).
# --------------------------------------------------------------------------
def init_params(key, emb_dim=EMB_DIM):
    def linear(k, fan_in, fan_out):
        kw, kb = jax.random.split(k)
        bound = 1.0 / jnp.sqrt(jnp.float32(fan_in))
        w = jax.random.uniform(kw, (fan_in, fan_out), jnp.float32, -bound, bound)
        b = jax.random.uniform(kb, (1, fan_out), jnp.float32, -bound, bound)
        return w, b

    k1, k2, k3, k4 = jax.random.split(key, 4)
    w1, b1 = linear(k1, 4 * emb_dim, ATTN_HIDDEN)   # attention Linear(4D, 80)
    w2, b2 = linear(k2, ATTN_HIDDEN, 1)             # attention Linear(80, 1)
    w3, b3 = linear(k3, 2 * emb_dim, CTR_HIDDEN)    # ctr Linear(2D, 128)
    w4, b4 = linear(k4, CTR_HIDDEN, 1)              # ctr Linear(128, 1)

    hp = ATTN_HIDDEN_PAD
    w1p = jnp.zeros((4 * emb_dim, hp), jnp.float32).at[:, :ATTN_HIDDEN].set(w1)
    b1p = jnp.zeros((1, hp), jnp.float32).at[:, :ATTN_HIDDEN].set(b1)
    # w2 stored transposed (1, H_pad) so the logits matmul is a trans_b contraction
    w2t = jnp.zeros((1, hp), jnp.float32).at[:, :ATTN_HIDDEN].set(w2[:, 0][None, :])

    return dict(w1=w1p, b1=b1p, w2t=w2t, b2=b2,
                w3=w3, b3=b3, w4=w4, b4=b4)


if __name__ == "__main__":
    key = jax.random.PRNGKey(0)
    kp, kc, ku = jax.random.split(key, 3)

    B, S, D = 2, 128, EMB_DIM          # seq_len >= TOP_K (SoftSearch default k=100)
    params = init_params(kp, D)
    candidate = jax.random.normal(kc, (B, D), jnp.float32)
    user_behavior = jax.random.normal(ku, (B, S, D), jnp.float32)

    fwd = jax.jit(partial(sim_with_ctr_forward, params))
    ctr = fwd(candidate, user_behavior)
    ctr = jax.block_until_ready(ctr)

    assert ctr.shape == (B,)
    assert bool(jnp.all(jnp.isfinite(ctr)))
    assert bool(jnp.all((ctr >= 0.0) & (ctr <= 1.0)))
    print("KERNEL_OK")
</pallas_src>

<mosaic_0001>
module attributes {stable_mosaic.version = 11 : i64} {
  func.func @cosine_sim_kernel(%arg0: i32, %arg1: memref<1x1x64xf32, #tpu.memory_space<vmem>>, %arg2: memref<1x128x64xf32, #tpu.memory_space<vmem>>, %arg3: memref<1x1x128xf32, #tpu.memory_space<vmem>>) attributes {dimension_semantics = [#tpu.dimension_semantics<parallel>], iteration_bounds = array<i64: 2>, scalar_prefetch = 0 : i64, scratch_operands = 0 : i64, tpu.core_type = #tpu.core_type<tc>, window_params = [{transform_indices = @transform_0, window_bounds = array<i64: 1, 1, 64>}, {transform_indices = @transform_1, window_bounds = array<i64: 1, 128, 64>}, {transform_indices = @transform_2, window_bounds = array<i64: 1, 1, 128>}]} {
    %c0 = arith.constant 0 : index
    %c0_0 = arith.constant 0 : index
    %c0_1 = arith.constant 0 : index
    %0 = vector.load %arg1[%c0, %c0_0, %c0_1] : memref<1x1x64xf32, #tpu.memory_space<vmem>>, vector<1x1x64xf32>
    %1 = vector.shape_cast %0 : vector<1x1x64xf32> to vector<1x64xf32>
    %c0_2 = arith.constant 0 : index
    %c0_3 = arith.constant 0 : index
    %c0_4 = arith.constant 0 : index
    %2 = vector.load %arg2[%c0_2, %c0_3, %c0_4] : memref<1x128x64xf32, #tpu.memory_space<vmem>>, vector<1x128x64xf32>
    %3 = vector.shape_cast %2 : vector<1x128x64xf32> to vector<128x64xf32>
    %cst = arith.constant dense<0.000000e+00> : vector<1x128xf32>
    %4 = tpu.matmul %1, %3, %cst {dimension_numbers = #tpu.dot_dimension_numbers<[1], [1], [0], [0], [0, 0, 1, 0], [], []>} : vector<1x64xf32>, vector<128x64xf32>, vector<1x128xf32> -> vector<1x128xf32>
    %cst_5 = arith.constant 1.000000e+00 : f32
    %5 = vector.broadcast %cst_5 : f32 to vector<1x64xf32>
    %6 = arith.mulf %3, %3 : vector<128x64xf32>
    %cst_6 = arith.constant dense<0.000000e+00> : vector<1x128xf32>
    %7 = tpu.matmul %5, %6, %cst_6 {dimension_numbers = #tpu.dot_dimension_numbers<[1], [1], [0], [0], [0, 0, 1, 0], [], []>} : vector<1x64xf32>, vector<128x64xf32>, vector<1x128xf32> -> vector<1x128xf32>
    %8 = arith.mulf %1, %1 : vector<1x64xf32>
    %cst_7 = arith.constant dense<0.000000e+00> : vector<1xf32>
    %9 = vector.multi_reduction <add>, %8, %cst_7 [1] : vector<1x64xf32> to vector<1xf32>
    %10 = vector.shape_cast %9 : vector<1xf32> to vector<1x1xf32>
    %11 = vector.broadcast %10 : vector<1x1xf32> to vector<1x128xf32>
    %12 = arith.mulf %11, %7 : vector<1x128xf32>
    %cst_8 = arith.constant 1.000000e-16 : f32
    %13 = vector.broadcast %cst_8 : f32 to vector<1x128xf32>
    %14 = arith.maximumf %12, %13 : vector<1x128xf32>
    %15 = math.rsqrt %14 : vector<1x128xf32>
    %16 = arith.mulf %4, %15 : vector<1x128xf32>
    %c0_9 = arith.constant 0 : index
    %c0_10 = arith.constant 0 : index
    %c0_11 = arith.constant 0 : index
    %17 = vector.load %arg3[%c0_9, %c0_10, %c0_11] : memref<1x1x128xf32, #tpu.memory_space<vmem>>, vector<1x1x128xf32>
    %18 = vector.shape_cast %17 : vector<1x1x128xf32> to vector<1x128xf32>
    %19 = vector.shape_cast %16 : vector<1x128xf32> to vector<1x1x128xf32>
    tpu.vector_store %arg3[%c0_9, %c0_10, %c0_11], %19 {strides = array<i32>} : memref<1x1x128xf32, #tpu.memory_space<vmem>>, vector<1x1x128xf32>,
    return
  }
  func.func @transform_0(%arg0: i32) -> (i32, i32, i32) {
    %c0_i32 = arith.constant 0 : i32
    %c0_i32_0 = arith.constant 0 : i32
    %c0_i32_1 = arith.constant 0 : i32
    return %arg0, %c0_i32, %c0_i32_0 : i32, i32, i32
  }
  func.func @transform_1(%arg0: i32) -> (i32, i32, i32) {
    %c0_i32 = arith.constant 0 : i32
    %c0_i32_0 = arith.constant 0 : i32
    %c0_i32_1 = arith.constant 0 : i32
    return %arg0, %c0_i32, %c0_i32_0 : i32, i32, i32
  }
  func.func @transform_2(%arg0: i32) -> (i32, i32, i32) {
    %c0_i32 = arith.constant 0 : i32
    %c0_i32_0 = arith.constant 0 : i32
    %c0_i32_1 = arith.constant 0 : i32
    return %arg0, %c0_i32, %c0_i32_0 : i32, i32, i32
  }
}

module attributes {stable_mosaic.version = 11 : i64} {
  func.func @interest_ctr_kernel(%arg0: i32, %arg1: memref<1x1x64xf32, #tpu.memory_space<vmem>>, %arg2: memref<1x128x64xf32, #tpu.memory_space<vmem>>, %arg3: memref<256x128xf32, #tpu.memory_space<vmem>>, %arg4: memref<1x128xf32, #tpu.memory_space<vmem>>, %arg5: memref<1x128xf32, #tpu.memory_space<vmem>>, %arg6: memref<1x1xf32, #tpu.memory_space<vmem>>, %arg7: memref<128x128xf32, #tpu.memory_space<vmem>>, %arg8: memref<1x128xf32, #tpu.memory_space<vmem>>, %arg9: memref<128x1xf32, #tpu.memory_space<vmem>>, %arg10: memref<1x1xf32, #tpu.memory_space<vmem>>, %arg11: memref<1x1x1xf32, #tpu.memory_space<vmem>>) attributes {dimension_semantics = [#tpu.dimension_semantics<parallel>], iteration_bounds = array<i64: 2>, scalar_prefetch = 0 : i64, scratch_operands = 0 : i64, tpu.core_type = #tpu.core_type<tc>, window_params = [{transform_indices = @transform_0, window_bounds = array<i64: 1, 1, 64>}, {transform_indices = @transform_1, window_bounds = array<i64: 1, 128, 64>}, {pipeline_mode = #tpu.pipeline_mode<synchronous>, transform_indices = @transform_2, window_bounds = array<i64: 256, 128>}, {pipeline_mode = #tpu.pipeline_mode<synchronous>, transform_indices = @transform_3, window_bounds = array<i64: 1, 128>}, {pipeline_mode = #tpu.pipeline_mode<synchronous>, transform_indices = @transform_4, window_bounds = array<i64: 1, 128>}, {pipeline_mode = #tpu.pipeline_mode<synchronous>, transform_indices = @transform_5, window_bounds = array<i64: 1, 1>}, {pipeline_mode = #tpu.pipeline_mode<synchronous>, transform_indices = @transform_6, window_bounds = array<i64: 128, 128>}, {pipeline_mode = #tpu.pipeline_mode<synchronous>, transform_indices = @transform_7, window_bounds = array<i64: 1, 128>}, {pipeline_mode = #tpu.pipeline_mode<synchronous>, transform_indices = @transform_8, window_bounds = array<i64: 128, 1>}, {pipeline_mode = #tpu.pipeline_mode<synchronous>, transform_indices = @transform_9, window_bounds = array<i64: 1, 1>}, {transform_indices = @transform_10, window_bounds = array<i64: 1, 1, 1>}]} {
    %c0 = arith.constant 0 : index
    %c0_0 = arith.constant 0 : index
    %c0_1 = arith.constant 0 : index
    %0 = vector.load %arg1[%c0, %c0_0, %c0_1] : memref<1x1x64xf32, #tpu.memory_space<vmem>>, vector<1x1x64xf32>
    %1 = vector.shape_cast %0 : vector<1x1x64xf32> to vector<1x64xf32>
    %c0_2 = arith.constant 0 : index
    %c0_3 = arith.constant 0 : index
    %c0_4 = arith.constant 0 : index
    %2 = vector.load %arg2[%c0_2, %c0_3, %c0_4] : memref<1x128x64xf32, #tpu.memory_space<vmem>>, vector<1x128x64xf32>
    %3 = vector.shape_cast %2 : vector<1x128x64xf32> to vector<128x64xf32>
    %4 = vector.shape_cast %1 : vector<1x64xf32> to vector<1x64xf32>
    %5 = vector.broadcast %4 : vector<1x64xf32> to vector<128x64xf32>
    %6 = arith.subf %5, %3 : vector<128x64xf32>
    %7 = arith.mulf %5, %3 : vector<128x64xf32>
    %8 = tpu.concatenate %5, %3, %6, %7 in 1 : vector<128x64xf32>, vector<128x64xf32>, vector<128x64xf32>, vector<128x64xf32> -> vector<128x256xf32>
    %c0_5 = arith.constant 0 : index
    %c0_6 = arith.constant 0 : index
    %9 = vector.load %arg3[%c0_5, %c0_6] : memref<256x128xf32, #tpu.memory_space<vmem>>, vector<256x128xf32>
    %cst = arith.constant dense<0.000000e+00> : vector<128x128xf32>
    %10 = tpu.matmul %8, %9, %cst {dimension_numbers = #tpu.dot_dimension_numbers<[1], [0], [0], [1], [0, 0, 1, 1], [], []>} : vector<128x256xf32>, vector<256x128xf32>, vector<128x128xf32> -> vector<128x128xf32>
    %c0_7 = arith.constant 0 : index
    %c0_8 = arith.constant 0 : index
    %11 = vector.load %arg4[%c0_7, %c0_8] : memref<1x128xf32, #tpu.memory_space<vmem>>, vector<1x128xf32>
    %12 = vector.broadcast %11 : vector<1x128xf32> to vector<128x128xf32>
    %13 = arith.addf %10, %12 : vector<128x128xf32>
    %cst_9 = arith.constant 0.000000e+00 : f32
    %14 = vector.broadcast %cst_9 : f32 to vector<128x128xf32>
    %15 = arith.maximumf %13, %14 : vector<128x128xf32>
    %c0_10 = arith.constant 0 : index
    %c0_11 = arith.constant 0 : index
    %16 = vector.load %arg5[%c0_10, %c0_11] : memref<1x128xf32, #tpu.memory_space<vmem>>, vector<1x128xf32>
    %cst_12 = arith.constant dense<0.000000e+00> : vector<1x128xf32>
    %17 = tpu.matmul %16, %15, %cst_12 {dimension_numbers = #tpu.dot_dimension_numbers<[1], [1], [0], [0], [0, 0, 1, 0], [], []>} : vector<1x128xf32>, vector<128x128xf32>, vector<1x128xf32> -> vector<1x128xf32>
    %c0_13 = arith.constant 0 : index
    %c0_14 = arith.constant 0 : index
    %18 = vector.load %arg6[%c0_13, %c0_14] : memref<1x1xf32, #tpu.memory_space<vmem>>, vector<1x1xf32>
    %19 = vector.broadcast %18 : vector<1x1xf32> to vector<1x128xf32>
    %20 = arith.addf %17, %19 : vector<1x128xf32>
    %21 = tpu.iota {dimensions = array<i32: 1>} : vector<1x128xi32>
    %c100_i32 = arith.constant 100 : i32
    %22 = vector.broadcast %c100_i32 : i32 to vector<1x128xi32>
    %23 = arith.cmpi slt, %21, %22 : vector<1x128xi32>
    %cst_15 = arith.constant -1.000000e+30 : f32
    %24 = vector.broadcast %cst_15 : f32 to vector<1x128xf32>
    %25 = arith.select %23, %20, %24 : vector<1x128xi1>, vector<1x128xf32>
    %cst_16 = arith.constant dense<0xFF800000> : vector<1xf32>
    %26 = vector.multi_reduction <maximumf>, %25, %cst_16 [1] : vector<1x128xf32> to vector<1xf32>
    %27 = vector.shape_cast %26 : vector<1xf32> to vector<1x1xf32>
    %28 = vector.broadcast %27 : vector<1x1xf32> to vector<1x128xf32>
    %29 = arith.subf %25, %28 : vector<1x128xf32>
    %30 = math.exp %29 : vector<1x128xf32>
    %cst_17 = arith.constant dense<0.000000e+00> : vector<1xf32>
    %31 = vector.multi_reduction <add>, %30, %cst_17 [1] : vector<1x128xf32> to vector<1xf32>
    %32 = vector.shape_cast %31 : vector<1xf32> to vector<1x1xf32>
    %cst_18 = arith.constant dense<0.000000e+00> : vector<1x64xf32>
    %33 = tpu.matmul %30, %3, %cst_18 {dimension_numbers = #tpu.dot_dimension_numbers<[1], [0], [0], [1], [0, 0, 1, 1], [], []>} : vector<1x128xf32>, vector<128x64xf32>, vector<1x64xf32> -> vector<1x64xf32>
    %34 = vector.broadcast %32 : vector<1x1xf32> to vector<1x64xf32>
    %35 = arith.divf %33, %34 : vector<1x64xf32>
    %36 = tpu.concatenate %35, %1 in 1 : vector<1x64xf32>, vector<1x64xf32> -> vector<1x128xf32>
    %c0_19 = arith.constant 0 : index
    %c0_20 = arith.constant 0 : index
    %37 = vector.load %arg7[%c0_19, %c0_20] : memref<128x128xf32, #tpu.memory_space<vmem>>, vector<128x128xf32>
    %cst_21 = arith.constant dense<0.000000e+00> : vector<1x128xf32>
    %38 = tpu.matmul %36, %37, %cst_21 {dimension_numbers = #tpu.dot_dimension_numbers<[1], [0], [0], [1], [0, 0, 1, 1], [], []>} : vector<1x128xf32>, vector<128x128xf32>, vector<1x128xf32> -> vector<1x128xf32>
    %c0_22 = arith.constant 0 : index
    %c0_23 = arith.constant 0 : index
    %39 = vector.load %arg8[%c0_22, %c0_23] : memref<1x128xf32, #tpu.memory_space<vmem>>, vector<1x128xf32>
    %40 = arith.addf %38, %39 : vector<1x128xf32>
    %cst_24 = arith.constant 0.000000e+00 : f32
    %41 = vector.broadcast %cst_24 : f32 to vector<1x128xf32>
    %42 = arith.maximumf %40, %41 : vector<1x128xf32>
    %c0_25 = arith.constant 0 : index
    %c0_26 = arith.constant 0 : index
    %43 = vector.load %arg9[%c0_25, %c0_26] : memref<128x1xf32, #tpu.memory_space<vmem>>, vector<128x1xf32>
    %cst_27 = arith.constant dense<0.000000e+00> : vector<1x1xf32>
    %44 = tpu.matmul %42, %43, %cst_27 {dimension_numbers = #tpu.dot_dimension_numbers<[1], [0], [0], [1], [0, 0, 1, 1], [], []>} : vector<1x128xf32>, vector<128x1xf32>, vector<1x1xf32> -> vector<1x1xf32>
    %c0_28 = arith.constant 0 : index
    %c0_29 = arith.constant 0 : index
    %45 = vector.load %arg10[%c0_28, %c0_29] : memref<1x1xf32, #tpu.memory_space<vmem>>, vector<1x1xf32>
    %46 = arith.addf %44, %45 : vector<1x1xf32>
    %cst_30 = arith.constant 5.000000e-01 : f32
    %47 = vector.broadcast %cst_30 : f32 to vector<1x1xf32>
    %48 = arith.mulf %47, %46 : vector<1x1xf32>
    %49 = math.tanh %48 : vector<1x1xf32>
    %cst_31 = arith.constant 1.000000e+00 : f32
    %50 = vector.broadcast %cst_31 : f32 to vector<1x1xf32>
    %51 = arith.addf %49, %50 : vector<1x1xf32>
    %cst_32 = arith.constant 5.000000e-01 : f32
    %52 = vector.broadcast %cst_32 : f32 to vector<1x1xf32>
    %53 = arith.mulf %52, %51 : vector<1x1xf32>
    %c0_33 = arith.constant 0 : index
    %c0_34 = arith.constant 0 : index
    %c0_35 = arith.constant 0 : index
    %54 = vector.load %arg11[%c0_33, %c0_34, %c0_35] : memref<1x1x1xf32, #tpu.memory_space<vmem>>, vector<1x1x1xf32>
    %55 = vector.shape_cast %54 : vector<1x1x1xf32> to vector<1x1xf32>
    %56 = vector.shape_cast %53 : vector<1x1xf32> to vector<1x1x1xf32>
    tpu.vector_store %arg11[%c0_33, %c0_34, %c0_35], %56 {strides = array<i32>} : memref<1x1x1xf32, #tpu.memory_space<vmem>>, vector<1x1x1xf32>,
    return
  }
  func.func @transform_0(%arg0: i32) -> (i32, i32, i32) {
    %c0_i32 = arith.constant 0 : i32
    %c0_i32_0 = arith.constant 0 : i32
    %c0_i32_1 = arith.constant 0 : i32
    return %arg0, %c0_i32, %c0_i32_0 : i32, i32, i32
  }
  func.func @transform_1(%arg0: i32) -> (i32, i32, i32) {
    %c0_i32 = arith.constant 0 : i32
    %c0_i32_0 = arith.constant 0 : i32
    %c0_i32_1 = arith.constant 0 : i32
    return %arg0, %c0_i32, %c0_i32_0 : i32, i32, i32
  }
  func.func @transform_2(%arg0: i32) -> (i32, i32) {
    %c0_i32 = arith.constant 0 : i32
    %c0_i32_0 = arith.constant 0 : i32
    %c0_i32_1 = arith.constant 0 : i32
    return %c0_i32, %c0_i32_0 : i32, i32
  }
  func.func @transform_3(%arg0: i32) -> (i32, i32) {
    %c0_i32 = arith.constant 0 : i32
    %c0_i32_0 = arith.constant 0 : i32
    %c0_i32_1 = arith.constant 0 : i32
    return %c0_i32, %c0_i32_0 : i32, i32
  }
  func.func @transform_4(%arg0: i32) -> (i32, i32) {
    %c0_i32 = arith.constant 0 : i32
    %c0_i32_0 = arith.constant 0 : i32
    %c0_i32_1 = arith.constant 0 : i32
    return %c0_i32, %c0_i32_0 : i32, i32
  }
  func.func @transform_5(%arg0: i32) -> (i32, i32) {
    %c0_i32 = arith.constant 0 : i32
    %c0_i32_0 = arith.constant 0 : i32
    %c0_i32_1 = arith.constant 0 : i32
    return %c0_i32, %c0_i32_0 : i32, i32
  }
  func.func @transform_6(%arg0: i32) -> (i32, i32) {
    %c0_i32 = arith.constant 0 : i32
    %c0_i32_0 = arith.constant 0 : i32
    %c0_i32_1 = arith.constant 0 : i32
    return %c0_i32, %c0_i32_0 : i32, i32
  }
  func.func @transform_7(%arg0: i32) -> (i32, i32) {
    %c0_i32 = arith.constant 0 : i32
    %c0_i32_0 = arith.constant 0 : i32
    %c0_i32_1 = arith.constant 0 : i32
    return %c0_i32, %c0_i32_0 : i32, i32
  }
  func.func @transform_8(%arg0: i32) -> (i32, i32) {
    %c0_i32 = arith.constant 0 : i32
    %c0_i32_0 = arith.constant 0 : i32
    %c0_i32_1 = arith.constant 0 : i32
    return %c0_i32, %c0_i32_0 : i32, i32
  }
  func.func @transform_9(%arg0: i32) -> (i32, i32) {
    %c0_i32 = arith.constant 0 : i32
    %c0_i32_0 = arith.constant 0 : i32
    %c0_i32_1 = arith.constant 0 : i32
    return %c0_i32, %c0_i32_0 : i32, i32
  }
  func.func @transform_10(%arg0: i32) -> (i32, i32, i32) {
    %c0_i32 = arith.constant 0 : i32
    %c0_i32_0 = arith.constant 0 : i32
    %c0_i32_1 = arith.constant 0 : i32
    return %arg0, %c0_i32, %c0_i32_0 : i32, i32, i32
  }
}

</mosaic_0001>

<bundles_post_ra>
// kernel: sim_with_ctr_forward.2
= control target key start
LH: loop header
LB: loop body
LE: loop exit
PB: predicated region body
PF: predicated region fallthrough
CT: control target
= control target key end

     0   :  { %s683_s9 = smov 0   ;;  %s799_s0 = inlined_call_operand.vmem [shape: f32[2,1,64], index: 0, kind: input, shape index: {}]   ;;  %s800_s1 = inlined_call_operand.vmem [shape: f32[2,128,64], index: 1, kind: input, shape index: {}]   ;;  %s801_s2 = inlined_call_operand.vmem [shape: f32[2,1,128], index: 2, kind: output, shape index: {}]  }
   0x1 LB: > { %s496_s10 = sadd.s32 4294967295, %s663_s9   ;;  %p500_p0 = scmp.ge.s32.totalorder %s663_s9, 1  ;;  %s663_s9 = sphi %s683_s9, %s12_s9  }
   0x2   : > { %p120_p1 = scmp.lt.s32.totalorder %s663_s9, 3 }
   0x4   : > { %p121_p2 = pnand %p500_p0, %p120_p1 }
   0x5   : > { %p143_p3 = scmp.lt.s32.totalorder (!%p121_p2), %s496_s10, 1 }
   0x6   : > { %124 = sbr.rel (%p121_p2) target bundleno = 294 (0x126), region = 28 }
   0xb   : > { %v665_v0 = vmov 0.0   ;;  %s803_s10 = smov (!%p143_p3, %s496_s10), 1  ;;  %vm666_vm0 = vmmov 0   ;;  %vm431_vm1 = vcmask 516096   ;;  %vm171_vm2 = vcmask 523264  }
   0xc   : > { %609 = vmatprep.subr.mxu1 %v665_v0  ;;  %574 = vmatprep.subr.mxu0 %v665_v0  ;;  %s539_s11 = sshll.u32 %s803_s10, 7  ;;  %s145_s14 = scalar_lea.vmem %s799_s0, %s803_s10  ;;  %v667_v36 = vmov 1.0  }
   0xd   : > { %641 = vmatprep.mubr.msk.f32.mxu1 %vm666_vm0, %v665_v0  ;;  %606 = vmatprep.mubr.msk.f32.mxu0 %vm666_vm0, %v665_v0  ;;  %s705_s17 = scalar_lea.vmem %s800_s1, %s539_s11  ;;  %v707_v1 = vld [vmem:[%s145_s14] sm:$0x1]  ;;  %s153_s20 = scalar_lea.vmem %s801_s2, %s803_s10 }
   0xe   : > { %v170_v2 = vld [vmem:[%s705_s17 + $0x78] sm:$0xff]  ;;  %v169_v3 = vld [vmem:[%s705_s17 + $0x70] sm:$0xff]  ;;  %v430_v4 = vmul.f32 %v707_v1, %v707_v1  ;;  %v168_v8 = vld [vmem:[%s705_s17 + $0x68] sm:$0xff] }
   0xf   : > { %v308_v5 = vmul.f32 %v170_v2, %v170_v2  ;;  %575 = vmatpush3.xpose.msk.msra.mxu0 %vm171_vm2, %v170_v2  ;;  %v307_v7 = vmul.f32 %v169_v3, %v169_v3  ;;  %v306_v9 = vmul.f32 %v168_v8, %v168_v8  ;;  %v167_v10 = vld [vmem:[%s705_s17 + $0x60] sm:$0xff]  ;;  %v166_v12 = vld [vmem:[%s705_s17 + $0x58] sm:$0xff]  ;;  %v165_v14 = vld [vmem:[%s705_s17 + $0x50] sm:$0xff] }
  0x10   : > { %576 = vmatprep.subr.mxu0 %v665_v0  ;;  %v432_v6 = vsel %vm431_vm1, %v430_v4, 0.0  ;;  %v305_v11 = vmul.f32 %v167_v10, %v167_v10  ;;  %v304_v13 = vmul.f32 %v166_v12, %v166_v12  ;;  %v303_v15 = vmul.f32 %v165_v14, %v165_v14  ;;  %v164_v16 = vld [vmem:[%s705_s17 + $0x48] sm:$0xff]  ;;  %v163_v18 = vld [vmem:[%s705_s17 + $0x40] sm:$0xff]  ;;  %v162_v20 = vld [vmem:[%s705_s17 + $0x38] sm:$0xff] }
  0x11   : > { %610 = vmatpush3.xpose.msk.msra.mxu1 %vm171_vm2, %v308_v5  ;;  %433 = vadd.xlane.f32.xlu0 %v432_v6  ;;  %v302_v17 = vmul.f32 %v164_v16, %v164_v16  ;;  %v301_v19 = vmul.f32 %v163_v18, %v163_v18  ;;  %v300_v21 = vmul.f32 %v162_v20, %v162_v20  ;;  %v161_v22 = vld [vmem:[%s705_s17 + $0x30] sm:$0xff]  ;;  %v160_v24 = vld [vmem:[%s705_s17 + $0x28] sm:$0xff]  ;;  %v159_v26 = vld [vmem:[%s705_s17 + $0x20] sm:$0xff] }
  0x12   : > { %611 = vmatprep.subr.mxu1 %v665_v0  ;;  %v299_v23 = vmul.f32 %v161_v22, %v161_v22  ;;  %v298_v25 = vmul.f32 %v160_v24, %v160_v24  ;;  %v297_v27 = vmul.f32 %v159_v26, %v159_v26  ;;  %v158_v28 = vld [vmem:[%s705_s17 + $0x18] sm:$0xff]  ;;  %v157_v30 = vld [vmem:[%s705_s17 + $0x10] sm:$0xff]  ;;  %v156_v32 = vld [vmem:[%s705_s17 + $0x8] sm:$0xff] }
  0x13   : > { %577 = vmatpush3.xpose.msk.msra.mxu0 %vm171_vm2, %v169_v3  ;;  %v296_v29 = vmul.f32 %v158_v28, %v158_v28  ;;  %v295_v31 = vmul.f32 %v157_v30, %v157_v30  ;;  %v294_v33 = vmul.f32 %v156_v32, %v156_v32  ;;  %v155_v34 = vld [vmem:[%s705_s17] sm:$0xff] }
  0x14   : > { %578 = vmatprep.subr.mxu0 %v665_v0  ;;  %v293_v35 = vmul.f32 %v155_v34, %v155_v34 }
  0x15   : > { %612 = vmatpush3.xpose.msk.msra.mxu1 %vm171_vm2, %v307_v7 }
  0x16   : > { %613 = vmatprep.subr.mxu1 %v665_v0 }
  0x17   : > { %579 = vmatpush3.xpose.msk.msra.mxu0 %vm171_vm2, %v168_v8 }
  0x18   : > { %580 = vmatprep.subr.mxu0 %v665_v0 }
  0x19   : > { %614 = vmatpush3.xpose.msk.msra.mxu1 %vm171_vm2, %v306_v9 }
  0x1a   : > { %615 = vmatprep.subr.mxu1 %v665_v0 }
  0x1b   : > { %581 = vmatpush3.xpose.msk.msra.mxu0 %vm171_vm2, %v167_v10 }
  0x1c   : > { %582 = vmatprep.subr.mxu0 %v665_v0 }
  0x1d   : > { %616 = vmatpush3.xpose.msk.msra.mxu1 %vm171_vm2, %v305_v11 }
  0x1e   : > { %617 = vmatprep.subr.mxu1 %v665_v0 }
  0x1f   : > { %583 = vmatpush3.xpose.msk.msra.mxu0 %vm171_vm2, %v166_v12 }
  0x20   : > { %584 = vmatprep.subr.mxu0 %v665_v0 }
  0x21   : > { %618 = vmatpush3.xpose.msk.msra.mxu1 %vm171_vm2, %v304_v13 }
  0x22   : > { %619 = vmatprep.subr.mxu1 %v665_v0 }
  0x23   : > { %585 = vmatpush3.xpose.msk.msra.mxu0 %vm171_vm2, %v165_v14 }
  0x24   : > { %586 = vmatprep.subr.mxu0 %v665_v0 }
  0x25   : > { %620 = vmatpush3.xpose.msk.msra.mxu1 %vm171_vm2, %v303_v15 }
  0x26   : > { %621 = vmatprep.subr.mxu1 %v665_v0 }
  0x27   : > { %587 = vmatpush3.xpose.msk.msra.mxu0 %vm171_vm2, %v164_v16 }
  0x28   : > { %588 = vmatprep.subr.mxu0 %v665_v0 }
  0x29   : > { %622 = vmatpush3.xpose.msk.msra.mxu1 %vm171_vm2, %v302_v17 }
  0x2a   : > { %623 = vmatprep.subr.mxu1 %v665_v0 }
  0x2b   : > { %589 = vmatpush3.xpose.msk.msra.mxu0 %vm171_vm2, %v163_v18 }
  0x2c   : > { %590 = vmatprep.subr.mxu0 %v665_v0 }
  0x2d   : > { %624 = vmatpush3.xpose.msk.msra.mxu1 %vm171_vm2, %v301_v19 }
  0x2e   : > { %625 = vmatprep.subr.mxu1 %v665_v0 }
  0x2f   : > { %591 = vmatpush3.xpose.msk.msra.mxu0 %vm171_vm2, %v162_v20 }
  0x30   : > { %592 = vmatprep.subr.mxu0 %v665_v0 }
  0x31   : > { %626 = vmatpush3.xpose.msk.msra.mxu1 %vm171_vm2, %v300_v21 }
  0x32   : > { %627 = vmatprep.subr.mxu1 %v665_v0 }
  0x33   : > { %593 = vmatpush3.xpose.msk.msra.mxu0 %vm171_vm2, %v161_v22 }
  0x34   : > { %594 = vmatprep.subr.mxu0 %v665_v0 }
  0x35   : > { %628 = vmatpush3.xpose.msk.msra.mxu1 %vm171_vm2, %v299_v23 }
  0x36   : > { %629 = vmatprep.subr.mxu1 %v665_v0 }
  0x37   : > { %595 = vmatpush3.xpose.msk.msra.mxu0 %vm171_vm2, %v160_v24 }
  0x38   : > { %596 = vmatprep.subr.mxu0 %v665_v0 }
  0x39   : > { %630 = vmatpush3.xpose.msk.msra.mxu1 %vm171_vm2, %v298_v25 }
  0x3a   : > { %631 = vmatprep.subr.mxu1 %v665_v0 }
  0x3b   : > { %597 = vmatpush3.xpose.msk.msra.mxu0 %vm171_vm2, %v159_v26 }
  0x3c   : > { %598 = vmatprep.subr.mxu0 %v665_v0 }
  0x3d   : > { %632 = vmatpush3.xpose.msk.msra.mxu1 %vm171_vm2, %v297_v27 }
  0x3e   : > { %633 = vmatprep.subr.mxu1 %v665_v0 }
  0x3f   : > { %599 = vmatpush3.xpose.msk.msra.mxu0 %vm171_vm2, %v158_v28 }
  0x40   : > { %600 = vmatprep.subr.mxu0 %v665_v0 }
  0x41   : > { %634 = vmatpush3.xpose.msk.msra.mxu1 %vm171_vm2, %v296_v29 }
  0x42   : > { %635 = vmatprep.subr.mxu1 %v665_v0 }
  0x43   : > { %601 = vmatpush3.xpose.msk.msra.mxu0 %vm171_vm2, %v157_v30 }
  0x44   : > { %602 = vmatprep.subr.mxu0 %v665_v0 }
  0x45   : > { %636 = vmatpush3.xpose.msk.msra.mxu1 %vm171_vm2, %v295_v31 }
  0x46   : > { %637 = vmatprep.subr.mxu1 %v665_v0 }
  0x47   : > { %603 = vmatpush3.xpose.msk.msra.mxu0 %vm171_vm2, %v156_v32 }
  0x48   : > { %604 = vmatprep.subr.mxu0 %v665_v0 }
  0x49   : > { %638 = vmatpush3.xpose.msk.msra.mxu1 %vm171_vm2, %v294_v33 }
  0x4a   : > { %639 = vmatprep.subr.mxu1 %v665_v0 }
  0x4b   : > { %605 = vmatpush3.xpose.msk.msra.mxu0 %vm171_vm2, %v155_v34 }
  0x4d   : > { %640 = vmatpush3.xpose.msk.msra.mxu1 %vm171_vm2, %v293_v35 }
  0x4e   : > { %607 = vmatmul.mubr.msk.f32.vlgmr.msra.gmra.mxu0 %vm171_vm2, %v707_v1 }
  0x50   : > { %642 = vmatmul.mubr.msk.f32.vlgmr.msra.gmra.mxu1 %vm171_vm2, %v667_v36 }
  0x9a   : > { %v434_v37 = vpop.xlane.xlu0 %433 }
 0x10e   : > { %v289_v38 = vpop.f32.mrf.mxu0 }
 0x110   : > { %v426_v39 = vpop.f32.mrf.mxu1  ;;  %v608_v40 = vpop.f32.mrf.mxu0 }
 0x111   : > { %v435_v41 = vmul.f32 %v434_v37, %v426_v39 }
 0x112   : > { %v643_v42 = vpop.f32.mrf.mxu1 }
 0x113   : > { %v436_v43 = vmax.f32 %v435_v41, 1e-16 }
 0x115   : > { %655 = vrsqrt.f32 %v436_v43 }
 0x122   : > { %v656_v44 = vpop.eup %655 }
 0x123   : > { %v438_v45 = vmul.f32 %v656_v44, %v289_v38 }
 0x125   : > { %439 = vst [vmem:[%s153_s20] sm:$0x1] %v438_v45 }
 0x126 PF: > { %s12_s9 = sadd.s32 1, %s663_s9  }
 0x127   : > { %p9_p4 = scmp.ge.s32.totalorder %s12_s9, 4  }
 0x129   :  { %11 = sbr.rel (!%p9_p4) target bundleno = 1 (0x1), region = 61 }

// kernel: sim_with_ctr_forward.3
= control target key start
LH: loop header
LB: loop body
LE: loop exit
PB: predicated region body
PF: predicated region fallthrough
CT: control target
= control target key end

     0   :  { %s1670_s17 = smov 0   ;;  %s2219_s0 = inlined_call_operand.vmem [shape: f32[2,1,64], index: 0, kind: input, shape index: {}]   ;;  %s2220_s1 = inlined_call_operand.vmem [shape: f32[2,128,64], index: 1, kind: input, shape index: {}]   ;;  %s2221_s2 = inlined_call_operand.vmem [shape: f32[256,128], index: 2, kind: input, shape index: {}]   ;;  %s2222_s3 = inlined_call_operand.vmem [shape: f32[1,128], index: 3, kind: input, shape index: {}]   ;;  %s2223_s4 = inlined_call_operand.vmem [shape: f32[1,128], index: 4, kind: input, shape index: {}]   ;;  %s2224_s5 = inlined_call_operand.<no memory space> [shape: f32[1,1], index: 5, kind: input, shape index: {}]   ;;  %s2225_s6 = inlined_call_operand.vmem [shape: f32[128,128], index: 6, kind: input, shape index: {}]   ;;  %s2226_s7 = inlined_call_operand.vmem [shape: f32[1,128], index: 7, kind: input, shape index: {}]   ;;  %s2227_s8 = inlined_call_operand.vmem [shape: f32[128,1], index: 8, kind: input, shape index: {}]   ;;  %s2228_s10 = inlined_call_operand.vmem [shape: f32[2,1,1], index: 10, kind: output, shape index: {}]   ;;  %s2229_s9 = inlined_call_operand.<no memory space> [shape: f32[1,1], index: 9, kind: input, shape index: {}]  }
   0x1   :  { %v15_v0 = vstv %s2224_s5  ;;  %v17_v1 = vstv %s2229_s9 }
   0x2   :  { %16 = vst [vmem:[#allocation2] sm:$0x1] %v15_v0  ;;  %18 = vst [vmem:[#allocation3] sm:$0x1] %v17_v1 }
   0x3 LB: > { %s1198_s18 = sadd.s32 4294967295, %s1603_s17   ;;  %p1202_p0 = scmp.ge.s32.totalorder %s1603_s17, 1  ;;  %s1603_s17 = sphi %s1670_s17, %s24_s17  }
   0x4   : > { %p324_p1 = scmp.lt.s32.totalorder %s1603_s17, 3 }
   0x6   : > { %p325_p2 = pnand %p1202_p0, %p324_p1 }
   0x7   : > { %p363_p3 = scmp.lt.s32.totalorder (!%p325_p2), %s1198_s18, 1  ;;  %s1605_s28 = smov (!%p325_p2), 64  }
   0x8   : > { %328 = sbr.rel (%p325_p2) target bundleno = 1428 (0x594), region = 60 }
   0xd   : > { %v621_v2 = vld [vmem:[%s2221_s2 + $0xf8] sm:$0xff]  ;;  %v620_v4 = vld [vmem:[%s2221_s2 + $0xf0] sm:$0xff]  ;;  %s2231_s18 = smov (!%p363_p3, %s1198_s18), 1  ;;  %v619_v6 = vld [vmem:[%s2221_s2 + $0xe8] sm:$0xff]  ;;  %vm557_vm0 = vcmask 523264   ;;  %vm1607_vm1 = vmmov 0  }
   0xe   : > { %v605_v3 = vld [vmem:[%s2221_s2 + $0x78] sm:$0xff]  ;;  %1210 = vmatprep.subr.mxu0 %v621_v2  ;;  %v604_v5 = vld [vmem:[%s2221_s2 + $0x70] sm:$0xff]  ;;  %v603_v7 = vld [vmem:[%s2221_s2 + $0x68] sm:$0xff]  ;;  %s365_s11 = scalar_lea.vmem %s2219_s0, %s2231_s18  ;;  %s1209_s12 = sshll.u32 %s2231_s18, 7  ;;  %vm875_vm3 = vcmask 1040384   ;;  %vm1140_vm4 = vcmask 0  }
   0xf   : > { %1211 = vmatpush3.msra.mxu0 %v605_v3  ;;  %v618_v8 = vld [vmem:[%s2221_s2 + $0xe0] sm:$0xff]  ;;  %s1709_s5 = scalar_lea.vmem %s2220_s1, %s1209_s12  ;;  %v617_v11 = vld [vmem:[%s2221_s2 + $0xd8] sm:$0xff]  ;;  %v616_v25 = vld [vmem:[%s2221_s2 + $0xd0] sm:$0xff]  ;;  %s373_s23 = scalar_lea.vmem %s2228_s10, %s2231_s18 }
  0x10   : > { %1212 = vmatprep.subr.mxu0 %v620_v4  ;;  %v1711_v9 = vld [vmem:[%s365_s11] ss:$0 sm:$0xff]  ;;  %v1723_v13 = vld [vmem:[%s1709_s5 + $0x8] sm:$0xff]  ;;  %v1726_v14 = vld [vmem:[%s1709_s5 + $0x10] sm:$0xff] }
  0x11   : > { %1213 = vmatpush3.msra.mxu0 %v604_v5  ;;  %v602_v10 = vld [vmem:[%s2221_s2 + $0x60] sm:$0xff]  ;;  %v414_v16 = vmul.f32 %v1711_v9, %v1723_v13  ;;  %v415_v17 = vmul.f32 %v1711_v9, %v1726_v14  ;;  %v1735_v18 = vld [vmem:[%s1709_s5 + $0x18] sm:$0xff]  ;;  %v1746_v22 = vld [vmem:[%s1709_s5 + $0x28] sm:$0xff] }
  0x12   : > { %1214 = vmatprep.subr.mxu0 %v619_v6  ;;  %v1720_v12 = vld [vmem:[%s1709_s5] sm:$0xff]  ;;  %v601_v20 = vld [vmem:[%s2221_s2 + $0x58] sm:$0xff]  ;;  %v416_v21 = vmul.f32 %v1711_v9, %v1735_v18  ;;  %v600_v27 = vld [vmem:[%s2221_s2 + $0x50] sm:$0xff]  ;;  %v418_v30 = vmul.f32 %v1711_v9, %v1746_v22 }
  0x13   : > { %1215 = vmatpush3.msra.mxu0 %v603_v7  ;;  %v413_v15 = vmul.f32 %v1711_v9, %v1720_v12  ;;  %v1738_v19 = vld [vmem:[%s1709_s5 + $0x20] sm:$0xff]  ;;  %v1520_v24 = vpack.i.bf16 %v1726_v14, %v415_v17  ;;  %v1515_v28 = vpack.i.bf16 %v1723_v13, %v414_v16  ;;  %v1765_v31 = vld [vmem:[%s1709_s5 + $0x30] sm:$0xff]  ;;  %v615_v32 = vld [vmem:[%s2221_s2 + $0xc8] sm:$0xff] }
  0x14   : > { %1216 = vmatprep.subr.mxu0 %v618_v8  ;;  %v417_v26 = vmul.f32 %v1711_v9, %v1738_v19  ;;  %v1525_v29 = vpack.i.bf16 %v1735_v18, %v416_v21  ;;  %v1771_v33 = vld [vmem:[%s1709_s5 + $0x38] sm:$0xff]  ;;  %v599_v34 = vld [vmem:[%s2221_s2 + $0x48] sm:$0xff]  ;;  %v419_v35 = vmul.f32 %v1711_v9, %v1765_v31  ;;  %v614_v36 = vld [vmem:[%s2221_s2 + $0xc0] sm:$0xff]  ;;  %v1535_v38 = vpack.i.bf16 %v1746_v22, %v418_v30 }
  0x15   : > { %1217 = vmatpush3.msra.mxu0 %v602_v10  ;;  %v1510_v23 = vpack.i.bf16 %v1720_v12, %v413_v15  ;;  %1521 = vrot.lane.b32.xlu1 %v1520_v24, %s1605_s28  ;;  %v420_v39 = vmul.f32 %v1711_v9, %v1771_v33  ;;  %v598_v40 = vld [vmem:[%s2221_s2 + $0x40] sm:$0xff]  ;;  %v1794_v42 = vld [vmem:[%s1709_s5 + $0x48] sm:$0xff]  ;;  %v613_v43 = vld [vmem:[%s2221_s2 + $0xb8] sm:$0xff] }
  0x16   : > { %1218 = vmatprep.subr.mxu0 %v617_v11  ;;  %v1530_v37 = vpack.i.bf16 %v1738_v19, %v417_v26  ;;  %v1791_v41 = vld [vmem:[%s1709_s5 + $0x40] sm:$0xff]  ;;  %v1540_v44 = vpack.i.bf16 %v1765_v31, %v419_v35  ;;  %v597_v45 = vld [vmem:[%s2221_s2 + $0x38] sm:$0xff]  ;;  %v422_v48 = vmul.f32 %v1711_v9, %v1794_v42  ;;  %v1811_v49 = vld [vmem:[%s1709_s5 + $0x50] sm:$0xff]  ;;  %v397_v26 = vsub.f32 %v1711_v9, %v1720_v12 }
  0x17   : > { %1219 = vmatpush3.msra.mxu0 %v601_v20  ;;  %1511 = vrot.lane.b32.xlu0 %v1510_v23, %s1605_s28  ;;  %v1545_v46 = vpack.i.bf16 %v1771_v33, %v420_v39  ;;  %v421_v47 = vmul.f32 %v1711_v9, %v1791_v41  ;;  %v612_v50 = vld [vmem:[%s2221_s2 + $0xb0] sm:$0xff]  ;;  %v1817_v51 = vld [vmem:[%s1709_s5 + $0x58] sm:$0xff]  ;;  %v423_v53 = vmul.f32 %v1711_v9, %v1811_v49  ;;  %v611_v54 = vld [vmem:[%s2221_s2 + $0xa8] sm:$0xff] }
  0x18   : > { %1220 = vmatprep.subr.mxu0 %v616_v25  ;;  %v596_v52 = vld [vmem:[%s2221_s2 + $0x30] sm:$0xff]  ;;  %v1555_v56 = vpack.i.bf16 %v1794_v42, %v422_v48  ;;  %v424_v57 = vmul.f32 %v1711_v9, %v1817_v51  ;;  %v1834_v58 = vld [vmem:[%s1709_s5 + $0x60] sm:$0xff]  ;;  %v595_v59 = vld [vmem:[%s2221_s2 + $0x28] sm:$0xff] }
  0x19   : > { %1221 = vmatpush3.msra.mxu0 %v600_v27  ;;  %1526 = vrot.lane.b32.xlu1 %v1525_v29, %s1605_s28  ;;  %v1550_v55 = vpack.i.bf16 %v1791_v41, %v421_v47  ;;  %v1840_v60 = vld [vmem:[%s1709_s5 + $0x68] sm:$0xff]  ;;  %v610_v61 = vld [vmem:[%s2221_s2 + $0xa0] sm:$0xff]  ;;  %v425_v62 = vmul.f32 %v1711_v9, %v1834_v58  ;;  %v1560_v0 = vpack.i.bf16 %v1811_v49, %v423_v53  ;;  %v1857_v3 = vld [vmem:[%s1709_s5 + $0x70] sm:$0xff] }
  0x1a   : > { %1222 = vmatprep.subr.mxu0 %v615_v32  ;;  %v594_v63 = vld [vmem:[%s2221_s2 + $0x20] sm:$0xff]  ;;  %v1565_v1 = vpack.i.bf16 %v1817_v51, %v424_v57  ;;  %v426_v2 = vmul.f32 %v1711_v9, %v1840_v60  ;;  %v609_v4 = vld [vmem:[%s2221_s2 + $0x98] sm:$0xff]  ;;  %v427_v7 = vmul.f32 %v1711_v9, %v1857_v3  ;;  %v608_v8 = vld [vmem:[%s2221_s2 + $0x90] sm:$0xff]  ;;  %v398_v32 = vsub.f32 %v1711_v9, %v1723_v13 }
  0x1b   : > { %1516 = vrot.lane.b32.xlu0 %v1515_v28, %s1605_s28  ;;  %1223 = vmatpush3.msra.mxu0 %v599_v34  ;;  %v1863_v5 = vld [vmem:[%s1709_s5 + $0x78] sm:$0xff]  ;;  %v1570_v10 = vpack.i.bf16 %v1834_v58, %v425_v62  ;;  %v592_v16 = vld [vmem:[%s2221_s2 + $0x10] sm:$0xff]  ;;  %v607_v17 = vld [vmem:[%s2221_s2 + $0x88] sm:$0xff]  ;;  %v401_v57 = vsub.f32 %v1711_v9, %v1738_v19 }
  0x1c   : > { %1224 = vmatprep.subr.mxu0 %v614_v36  ;;  %v593_v6 = vld [vmem:[%s2221_s2 + $0x18] sm:$0xff]  ;;  %v1575_v11 = vpack.i.bf16 %v1840_v60, %v426_v2  ;;  %v428_v15 = vmul.f32 %v1711_v9, %v1863_v5  ;;  %v591_v20 = vld [vmem:[%s2221_s2 + $0x8] sm:$0xff]  ;;  %v1580_v21 = vpack.i.bf16 %v1857_v3, %v427_v7  ;;  %v606_v24 = vld [vmem:[%s2221_s2 + $0x80] sm:$0xff] }
  0x1d   : > { %1225 = vmatpush3.msra.mxu0 %v598_v40  ;;  %1536 = vrot.lane.b32.xlu1 %v1535_v38, %s1605_s28  ;;  %v590_v25 = vld [vmem:[%s2221_s2] sm:$0xff] }
  0x1e   : > { %1226 = vmatprep.subr.mxu0 %v613_v43  ;;  %v1585_v23 = vpack.i.bf16 %v1863_v5, %v428_v15 }
  0x1f   : > { %1531 = vrot.lane.b32.xlu0 %v1530_v37, %s1605_s28  ;;  %1227 = vmatpush3.msra.mxu0 %v597_v45  ;;  %v399_v37 = vsub.f32 %v1711_v9, %v1726_v14  ;;  %v400_v45 = vsub.f32 %v1711_v9, %v1735_v18 }
  0x20   : > { %1228 = vmatprep.subr.mxu0 %v612_v50 }
  0x21   : > { %1546 = vrot.lane.b32.xlu1 %v1545_v46, %s1605_s28  ;;  %1229 = vmatpush3.msra.mxu0 %v596_v52 }
  0x22   : > { %1230 = vmatprep.subr.mxu0 %v611_v54 }
  0x23   : > { %1541 = vrot.lane.b32.xlu0 %v1540_v44, %s1605_s28  ;;  %1231 = vmatpush3.msra.mxu0 %v595_v59 }
  0x24   : > { %1232 = vmatprep.subr.mxu0 %v610_v61 }
  0x25   : > { %1556 = vrot.lane.b32.xlu1 %v1555_v56, %s1605_s28  ;;  %1233 = vmatpush3.msra.mxu0 %v594_v63 }
  0x26   : > { %1234 = vmatprep.subr.mxu0 %v609_v4 }
  0x27   : > { %1551 = vrot.lane.b32.xlu0 %v1550_v55, %s1605_s28  ;;  %1235 = vmatpush3.msra.mxu0 %v593_v6 }
  0x28   : > { %1236 = vmatprep.subr.mxu0 %v608_v8 }
  0x29   : > { %1566 = vrot.lane.b32.xlu1 %v1565_v1, %s1605_s28  ;;  %1237 = vmatpush3.msra.mxu0 %v592_v16  ;;  %v402_v1 = vsub.f32 %v1711_v9, %v1746_v22 }
  0x2a   : > { %1238 = vmatprep.subr.mxu0 %v607_v17 }
  0x2b   : > { %1561 = vrot.lane.b32.xlu0 %v1560_v0, %s1605_s28  ;;  %1239 = vmatpush3.msra.mxu0 %v591_v20 }
  0x2c   : > { %1240 = vmatprep.subr.mxu0 %v606_v24 }
  0x2d   : > { %1576 = vrot.lane.b32.xlu1 %v1575_v11, %s1605_s28  ;;  %1241 = vmatpush3.msra.mxu0 %v590_v25 }
  0x2f   : > { %1571 = vrot.lane.b32.xlu0 %v1570_v10, %s1605_s28  ;;  %v403_v10 = vsub.f32 %v1711_v9, %v1765_v31 }
  0x31   : > { %1586 = vrot.lane.b32.xlu1 %v1585_v23, %s1605_s28 }
  0x33   : > { %1581 = vrot.lane.b32.xlu0 %v1580_v21, %s1605_s28  ;;  %v404_v21 = vsub.f32 %v1711_v9, %v1771_v33 }
  0x87   : > { %v1522_v28 = vpop.permute.xlu1 %1521 }
  0x88   : > { %v1523_v36 = vunpack.i.l.bf16 %v1522_v28  ;;  %v1524_v44 = vunpack.i.h.bf16 %v1522_v28  ;;  %v405_v28 = vsub.f32 %v1711_v9, %v1791_v41 }
  0x89   : > { %v1512_v27 = vpop.permute.xlu0 %1511 }
  0x8a   : > { %v1514_v29 = vunpack.i.h.bf16 %v1512_v27  ;;  %v1513_v30 = vunpack.i.l.bf16 %v1512_v27  ;;  %v576_v50 = vsel %vm557_vm0, %v399_v37, %v1523_v36  ;;  %v560_v54 = vsel %vm557_vm0, %v1711_v9, %v1524_v44 }
  0x8b   : > { %v1527_v39 = vpop.permute.xlu1 %1526  ;;  %v406_v36 = vsub.f32 %v1711_v9, %v1794_v42  ;;  %v407_v44 = vsub.f32 %v1711_v9, %v1811_v49 }
  0x8c   : > { %v574_v34 = vsel %vm557_vm0, %v397_v26, %v1513_v30  ;;  %v558_v35 = vsel %vm557_vm0, %v1711_v9, %v1514_v29  ;;  %v1528_v48 = vunpack.i.l.bf16 %v1527_v39  ;;  %v1529_v53 = vunpack.i.h.bf16 %v1527_v39 }
  0x8d   : > { %v1517_v38 = vpop.permute.xlu0 %1516  ;;  %693 = vmatprep.mubr.f32.mxu0 %v574_v34 }
  0x8e   : > { %v1519_v40 = vunpack.i.h.bf16 %v1517_v38  ;;  %v1518_v43 = vunpack.i.l.bf16 %v1517_v38  ;;  %694 = vmatmul.mubr.f32.vlgmr.msra.gmra.mxu0 %v558_v35  ;;  %v577_v56 = vsel %vm557_vm0, %v400_v45, %v1528_v48  ;;  %v561_v62 = vsel %vm557_vm0, %v1711_v9, %v1529_v53 }
  0x8f   : > { %v1537_v59 = vpop.permute.xlu1 %1536 }
  0x90   : > { %v575_v46 = vsel %vm557_vm0, %v398_v32, %v1518_v43  ;;  %v559_v47 = vsel %vm557_vm0, %v1711_v9, %v1519_v40  ;;  %v1538_v63 = vunpack.i.l.bf16 %v1537_v59  ;;  %v1539_v4 = vunpack.i.h.bf16 %v1537_v59 }
  0x91   : > { %698 = vmatprep.mubr.f32.mxu0 %v575_v46  ;;  %v1532_v52 = vpop.permute.xlu0 %1531  ;;  %v409_v59 = vsub.f32 %v1711_v9, %v1834_v58 }
  0x92   : > { %699 = vmatmul.mubr.f32.gmra.mxu0 %v559_v47  ;;  %v1533_v55 = vunpack.i.l.bf16 %v1532_v52  ;;  %v1534_v61 = vunpack.i.h.bf16 %v1532_v52  ;;  %v579_v8 = vsel %vm557_vm0, %v402_v1, %v1538_v63  ;;  %v563_v16 = vsel %vm557_vm0, %v1711_v9, %v1539_v4 }
  0x93   : > { %703 = vmatprep.mubr.f32.mxu0 %v576_v50  ;;  %v1547_v11 = vpop.permute.xlu1 %1546  ;;  %v408_v52 = vsub.f32 %v1711_v9, %v1817_v51 }
  0x94   : > { %v578_v0 = vsel %vm557_vm0, %v401_v57, %v1533_v55  ;;  %v562_v6 = vsel %vm557_vm0, %v1711_v9, %v1534_v61  ;;  %v1548_v17 = vunpack.i.l.bf16 %v1547_v11  ;;  %v1549_v24 = vunpack.i.h.bf16 %v1547_v11 }
  0x95   : > { %v1542_v2 = vpop.permute.xlu0 %1541  ;;  %v411_v11 = vsub.f32 %v1711_v9, %v1857_v3 }
  0x96   : > { %704 = vmatmul.mubr.f32.gmra.mxu0 %v560_v54  ;;  %v1543_v7 = vunpack.i.l.bf16 %v1542_v2  ;;  %v1544_v15 = vunpack.i.h.bf16 %v1542_v2  ;;  %v581_v27 = vsel %vm557_vm0, %v404_v21, %v1548_v17  ;;  %v565_v32 = vsel %vm557_vm0, %v1711_v9, %v1549_v24 }
  0x97   : > { %708 = vmatprep.mubr.f32.mxu0 %v577_v56  ;;  %v1557_v29 = vpop.permute.xlu1 %1556  ;;  %v410_v2 = vsub.f32 %v1711_v9, %v1840_v60 }
  0x98   : > { %v580_v20 = vsel %vm557_vm0, %v403_v10, %v1543_v7  ;;  %v564_v25 = vsel %vm557_vm0, %v1711_v9, %v1544_v15  ;;  %v1558_v34 = vunpack.i.l.bf16 %v1557_v29  ;;  %v1559_v38 = vunpack.i.h.bf16 %v1557_v29 }
  0x99   : > { %v1552_v23 = vpop.permute.xlu0 %1551 }
  0x9a   : > { %709 = vmatmul.mubr.f32.gmra.mxu0 %v561_v62  ;;  %v1553_v26 = vunpack.i.l.bf16 %v1552_v23  ;;  %v1554_v30 = vunpack.i.h.bf16 %v1552_v23  ;;  %v583_v43 = vsel %vm557_vm0, %v406_v36, %v1558_v34  ;;  %v567_v47 = vsel %vm557_vm0, %v1711_v9, %v1559_v38 }
  0x9b   : > { %713 = vmatprep.mubr.f32.mxu0 %v578_v0  ;;  %v1567_v45 = vpop.permute.xlu1 %1566  ;;  %v412_v23 = vsub.f32 %v1711_v9, %v1863_v5 }
  0x9c   : > { %v582_v35 = vsel %vm557_vm0, %v405_v28, %v1553_v26  ;;  %v566_v39 = vsel %vm557_vm0, %v1711_v9, %v1554_v30  ;;  %v1568_v48 = vunpack.i.l.bf16 %v1567_v45  ;;  %v1569_v54 = vunpack.i.h.bf16 %v1567_v45 }
  0x9d   : > { %v1562_v37 = vpop.permute.xlu0 %1561  ;;  %v1606_v28 = vmov 0.0  }
  0x9e   : > { %714 = vmatmul.mubr.f32.gmra.mxu0 %v562_v6  ;;  %v1563_v40 = vunpack.i.l.bf16 %v1562_v37  ;;  %v1564_v46 = vunpack.i.h.bf16 %v1562_v37  ;;  %v585_v57 = vsel %vm557_vm0, %v408_v52, %v1568_v48  ;;  %v569_v63 = vsel %vm557_vm0, %v1711_v9, %v1569_v54  ;;  %1358 = vmatprep.subr.mxu1 %v1606_v28 }
  0x9f   : > { %718 = vmatprep.mubr.f32.mxu0 %v579_v8  ;;  %v1577_v61 = vpop.permute.xlu1 %1576  ;;  %1393 = vmatprep.subr.mxu0 %v1606_v28 }
  0xa0   : > { %v584_v50 = vsel %vm557_vm0, %v407_v44, %v1563_v40  ;;  %v568_v55 = vsel %vm557_vm0, %v1711_v9, %v1564_v46  ;;  %v1578_v0 = vunpack.i.l.bf16 %v1577_v61  ;;  %v1579_v6 = vunpack.i.h.bf16 %v1577_v61  ;;  %1394 = vmatpush3.msra.mxu0 %v1863_v5  ;;  %1390 = vmatprep.mubr.msk.f32.mxu1 %vm1607_vm1, %v1606_v28 }
  0xa1   : > { %v1572_v53 = vpop.permute.xlu0 %1571  ;;  %1395 = vmatprep.subr.mxu0 %v1606_v28 }
  0xa2   : > { %719 = vmatmul.mubr.f32.gmra.mxu0 %v563_v16  ;;  %v1573_v56 = vunpack.i.l.bf16 %v1572_v53  ;;  %v1574_v62 = vunpack.i.h.bf16 %v1572_v53  ;;  %v587_v10 = vsel %vm557_vm0, %v410_v2, %v1578_v0  ;;  %v571_v17 = vsel %vm557_vm0, %v1711_v9, %v1579_v6 }
  0xa3   : > { %723 = vmatprep.mubr.f32.mxu0 %v580_v20  ;;  %v1587_v15 = vpop.permute.xlu1 %1586  ;;  %1396 = vmatpush3.msra.mxu0 %v1857_v3 }
  0xa4   : > { %v586_v1 = vsel %vm557_vm0, %v409_v59, %v1573_v56  ;;  %v570_v7 = vsel %vm557_vm0, %v1711_v9, %v1574_v62  ;;  %v1588_v20 = vunpack.i.l.bf16 %v1587_v15  ;;  %v1589_v24 = vunpack.i.h.bf16 %v1587_v15  ;;  %1397 = vmatprep.subr.mxu0 %v1606_v28 }
  0xa5   : > { %v1582_v4 = vpop.permute.xlu0 %1581  ;;  %1398 = vmatpush3.msra.mxu0 %v1840_v60 }
  0xa6   : > { %724 = vmatmul.mubr.f32.gmra.mxu0 %v564_v25  ;;  %v1583_v8 = vunpack.i.l.bf16 %v1582_v4  ;;  %v1584_v16 = vunpack.i.h.bf16 %v1582_v4  ;;  %v589_v26 = vsel %vm557_vm0, %v412_v23, %v1588_v20  ;;  %1399 = vmatprep.subr.mxu0 %v1606_v28 }
  0xa7   : > { %728 = vmatprep.mubr.f32.mxu0 %v581_v27  ;;  %v573_v27 = vsel %vm557_vm0, %v1711_v9, %v1589_v24  ;;  %1400 = vmatpush3.msra.mxu0 %v1834_v58 }
  0xa8   : > { %v588_v21 = vsel %vm557_vm0, %v411_v11, %v1583_v8  ;;  %v572_v25 = vsel %vm557_vm0, %v1711_v9, %v1584_v16  ;;  %1401 = vmatprep.subr.mxu0 %v1606_v28 }
  0xa9   : > { %1402 = vmatpush3.msra.mxu0 %v1817_v51 }
  0xaa   : > { %729 = vmatmul.mubr.f32.gmra.mxu0 %v565_v32  ;;  %1403 = vmatprep.subr.mxu0 %v1606_v28 }
  0xab   : > { %733 = vmatprep.mubr.f32.mxu0 %v582_v35  ;;  %1404 = vmatpush3.msra.mxu0 %v1811_v49 }
  0xac   : > { %1405 = vmatprep.subr.mxu0 %v1606_v28 }
  0xad   : > { %1406 = vmatpush3.msra.mxu0 %v1794_v42 }
  0xae   : > { %734 = vmatmul.mubr.f32.gmra.mxu0 %v566_v39  ;;  %1407 = vmatprep.subr.mxu0 %v1606_v28 }
  0xaf   : > { %738 = vmatprep.mubr.f32.mxu0 %v583_v43  ;;  %1408 = vmatpush3.msra.mxu0 %v1791_v41 }
  0xb0   : > { %1409 = vmatprep.subr.mxu0 %v1606_v28 }
  0xb1   : > { %1410 = vmatpush3.msra.mxu0 %v1771_v33 }
  0xb2   : > { %739 = vmatmul.mubr.f32.gmra.mxu0 %v567_v47  ;;  %1411 = vmatprep.subr.mxu0 %v1606_v28 }
  0xb3   : > { %743 = vmatprep.mubr.f32.mxu0 %v584_v50  ;;  %1412 = vmatpush3.msra.mxu0 %v1765_v31  ;;  %v791_v31 = vld [vmem:[#allocation2] sm:$0x1] }
  0xb4   : > { %1413 = vmatprep.subr.mxu0 %v1606_v28 }
  0xb5   : > { %1414 = vmatpush3.msra.mxu0 %v1746_v22 }
  0xb6   : > { %744 = vmatmul.mubr.f32.gmra.mxu0 %v568_v55  ;;  %1415 = vmatprep.subr.mxu0 %v1606_v28 }
  0xb7   : > { %748 = vmatprep.mubr.f32.mxu0 %v585_v57  ;;  %1416 = vmatpush3.msra.mxu0 %v1738_v19 }
  0xb8   : > { %1417 = vmatprep.subr.mxu0 %v1606_v28 }
  0xb9   : > { %1418 = vmatpush3.msra.mxu0 %v1735_v18 }
  0xba   : > { %749 = vmatmul.mubr.f32.gmra.mxu0 %v569_v63  ;;  %1419 = vmatprep.subr.mxu0 %v1606_v28 }
  0xbb   : > { %753 = vmatprep.mubr.f32.mxu0 %v586_v1  ;;  %1420 = vmatpush3.msra.mxu0 %v1726_v14  ;;  %v2033_v1 = vld [vmem:[%s2222_s3] ss:$0 sm:$0xff] }
  0xbc   : > { %1421 = vmatprep.subr.mxu0 %v1606_v28 }
  0xbd   : > { %1422 = vmatpush3.msra.mxu0 %v1723_v13  ;;  %v1608_v13 = vmov 0  }
  0xbe   : > { %754 = vmatmul.mubr.f32.gmra.mxu0 %v570_v7  ;;  %1423 = vmatprep.subr.mxu0 %v1606_v28 }
  0xbf   : > { %758 = vmatprep.mubr.f32.mxu0 %v587_v10  ;;  %1424 = vmatpush3.msra.mxu0 %v1720_v12 }
  0xc0   : > { %1463 = vmatprep.subr.mxu0 %v1606_v28  ;;  %1590 = vset.pattern.permute.xlu0 %v1608_v13 }
  0xc1   : > { %794 = vperm.xlu0 %1590, %v791_v31  }
  0xc2   : > { %759 = vmatmul.mubr.f32.gmra.mxu0 %v571_v17 }
  0xc3   : > { %763 = vmatprep.mubr.f32.mxu0 %v588_v21 }
  0xc6   : > { %764 = vmatmul.mubr.f32.gmra.mxu0 %v572_v25 }
  0xc7   : > { %768 = vmatprep.mubr.f32.mxu0 %v589_v26 }
  0xca   : > { %769 = vmatmul.mubr.f32.gmra.mxu0 %v573_v27 }
  0xcb   : > { %1425 = vmatprep.mubr.msk.f32.mxu0 %vm1607_vm1, %v1606_v28 }
 0x14e   : > { %v1242_v22 = vpop.f32.mrf.mxu0 }
 0x150   : > { %v1243_v19 = vpop.f32.mrf.mxu0 }
 0x151   : > { %v2018_v14 = vadd.f32 %v1243_v19, %v1242_v22 }
 0x152   : > { %v1245_v18 = vpop.f32.mrf.mxu0 }
 0x154   : > { %v1246_v33 = vpop.f32.mrf.mxu0 }
 0x155   : > { %v2020_v12 = vadd.f32 %v1246_v33, %v1245_v18 }
 0x156   : > { %v1248_v41 = vpop.f32.mrf.mxu0 }
 0x158   : > { %v1249_v42 = vpop.f32.mrf.mxu0 }
 0x159   : > { %v2022_v49 = vadd.f32 %v1249_v42, %v1248_v41 }
 0x15a   : > { %v1251_v51 = vpop.f32.mrf.mxu0 }
 0x15c   : > { %v1252_v58 = vpop.f32.mrf.mxu0 }
 0x15d   : > { %v2024_v60 = vadd.f32 %v1252_v58, %v1251_v51 }
 0x15e   : > { %v1254_v3 = vpop.f32.mrf.mxu0 }
 0x160   : > { %v1255_v5 = vpop.f32.mrf.mxu0 }
 0x161   : > { %v2026_v29 = vadd.f32 %v1255_v5, %v1254_v3 }
 0x162   : > { %v1257_v30 = vpop.f32.mrf.mxu0 }
 0x163   : > { %v716_v3 = vadd.f32 %v2026_v29, %v2033_v1  ;;  %v701_v29 = vadd.f32 %v2020_v12, %v2033_v1  ;;  %v797_v12 = vlaneseq }
 0x164   : > { %v1258_v32 = vpop.f32.mrf.mxu0 }
 0x165   : > { %v2028_v34 = vadd.f32 %v1258_v32, %v1257_v30  ;;  %v711_v30 = vadd.f32 %v2024_v60, %v2033_v1  ;;  %v778_v32 = vmax.f32 %v716_v3, 0.0  ;;  %v696_v60 = vadd.f32 %v2018_v14, %v2033_v1  ;;  %v795_v14 = vpop.permute.xlu0 %794 }
 0x166   : > { %v1260_v35 = vpop.f32.mrf.mxu0 }
 0x167   : > { %v721_v51 = vadd.f32 %v2028_v34, %v2033_v1  ;;  %v706_v34 = vadd.f32 %v2022_v49, %v2033_v1  ;;  %v790_v49 = vld [vmem:[%s2223_s4] sm:$0x1] }
 0x168   : > { %v1261_v36 = vpop.f32.mrf.mxu0 }
 0x169   : > { %v1262_v37 = vadd.f32 %v1261_v36, %v1260_v35  ;;  %v779_v5 = vmax.f32 %v721_v51, 0.0  ;;  %v777_v35 = vmax.f32 %v711_v30, 0.0  ;;  %v776_v36 = vmax.f32 %v706_v34, 0.0  ;;  %v1050_v30 = vld [vmem:[%s2227_s8 + $0x8] sm:$0xff]  ;;  %v977_v34 = vld [vmem:[%s2226_s7] sm:$0x1] }
 0x16a   : > { %v1263_v38 = vpop.f32.mrf.mxu0 }
 0x16b   : > { %v726_v41 = vadd.f32 %v1262_v37, %v2033_v1  ;;  %v775_v37 = vmax.f32 %v701_v29, 0.0 }
 0x16c   : > { %v1264_v39 = vpop.f32.mrf.mxu0 }
 0x16d   : > { %v1265_v40 = vadd.f32 %v1264_v39, %v1263_v38  ;;  %v780_v58 = vmax.f32 %v726_v41, 0.0  ;;  %v774_v38 = vmax.f32 %v696_v60, 0.0  ;;  %v798_v39 = vshrl.u32 %v797_v12, 7 }
 0x16e   : > { %v1266_v43 = vpop.f32.mrf.mxu0 }
 0x16f   : > { %v731_v13 = vadd.f32 %v1265_v40, %v2033_v1  ;;  %v799_v40 = vsub.s32 0, %v798_v39 }
 0x170   : > { %v1267_v44 = vpop.f32.mrf.mxu0 }
 0x171   : > { %v1268_v27 = vadd.f32 %v1267_v44, %v1266_v43  ;;  %v781_v42 = vmax.f32 %v731_v13, 0.0  ;;  %v872_v43 = vand.u32 127, %v797_v12  ;;  %v800_v44 = vrot.slane %v795_v14, %v799_v40 }
 0x172   : > { %v1269_v45 = vpop.f32.mrf.mxu0 }
 0x173   : > { %v736_v18 = vadd.f32 %v1268_v27, %v2033_v1  ;;  %vm873_vm2 = vcmp.lt.s32.totalorder %v872_v43, 100  ;;  %v1056_v27 = vld [vmem:[%s2227_s8 + $0x38] sm:$0xff] }
 0x174   : > { %v1270_v46 = vpop.f32.mrf.mxu0 }
 0x175   : > { %v1271_v24 = vadd.f32 %v1270_v46, %v1269_v45  ;;  %v782_v33 = vmax.f32 %v736_v18, 0.0  ;;  %v1053_v18 = vld [vmem:[%s2227_s8 + $0x20] sm:$0xff] }
 0x176   : > { %v1272_v47 = vpop.f32.mrf.mxu0 }
 0x177   : > { %v741_v22 = vadd.f32 %v1271_v24, %v2033_v1  ;;  %v1059_v24 = vld [vmem:[%s2227_s8 + $0x50] sm:$0xff] }
 0x178   : > { %v1273_v48 = vpop.f32.mrf.mxu0 }
 0x179   : > { %v1274_v20 = vadd.f32 %v1273_v48, %v1272_v47  ;;  %v783_v31 = vmax.f32 %v741_v22, 0.0  ;;  %v1055_v22 = vld [vmem:[%s2227_s8 + $0x30] sm:$0xff] }
 0x17a   : > { %v1275_v50 = vpop.f32.mrf.mxu0 }
 0x17b   : > { %v746_v25 = vadd.f32 %v1274_v20, %v2033_v1  ;;  %v1062_v20 = vld [vmem:[%s2227_s8 + $0x68] sm:$0xff] }
 0x17c   : > { %v1276_v52 = vpop.f32.mrf.mxu0 }
 0x17d   : > { %v1277_v15 = vadd.f32 %v1276_v52, %v1275_v50  ;;  %v784_v19 = vmax.f32 %v746_v25, 0.0  ;;  %v1058_v25 = vld [vmem:[%s2227_s8 + $0x48] sm:$0xff] }
 0x17e   : > { %v1278_v53 = vpop.f32.mrf.mxu0 }
 0x17f   : > { %v751_v21 = vadd.f32 %v1277_v15, %v2033_v1  ;;  %v961_v15 = vld [vmem:[%s2225_s6] sm:$0xff] }
 0x180   : > { %v1279_v54 = vpop.f32.mrf.mxu0 }
 0x181   : > { %v1280_v8 = vadd.f32 %v1279_v54, %v1278_v53  ;;  %v785_v26 = vmax.f32 %v751_v21, 0.0  ;;  %v1061_v21 = vld [vmem:[%s2227_s8 + $0x60] sm:$0xff] }
 0x182   : > { %v1281_v55 = vpop.f32.mrf.mxu0 }
 0x183   : > { %v756_v16 = vadd.f32 %v1280_v8, %v2033_v1  ;;  %v964_v8 = vld [vmem:[%s2225_s6 + $0x18] sm:$0xff] }
 0x184   : > { %v1282_v56 = vpop.f32.mrf.mxu0 }
 0x185   : > { %v1283_v4 = vadd.f32 %v1282_v56, %v1281_v55  ;;  %v786_v23 = vmax.f32 %v756_v16, 0.0  ;;  %v1064_v16 = vld [vmem:[%s2227_s8 + $0x78] sm:$0xff] }
 0x186   : > { %v1284_v57 = vpop.f32.mrf.mxu0 }
 0x187   : > { %v761_v10 = vadd.f32 %v1283_v4, %v2033_v1  ;;  %v967_v4 = vld [vmem:[%s2225_s6 + $0x30] sm:$0xff] }
 0x188   : > { %v1285_v59 = vpop.f32.mrf.mxu0 }
 0x189   : > { %v1286_v63 = vadd.f32 %v1285_v59, %v1284_v57  ;;  %v787_v17 = vmax.f32 %v761_v10, 0.0  ;;  %v976_v57 = vld [vmem:[%s2225_s6 + $0x78] sm:$0xff]  ;;  %v975_v59 = vld [vmem:[%s2225_s6 + $0x70] sm:$0xff] }
 0x18a   : > { %v1287_v61 = vpop.f32.mrf.mxu0  ;;  %v963_v10 = vld [vmem:[%s2225_s6 + $0x10] sm:$0xff] }
 0x18b   : > { %v766_v6 = vadd.f32 %v1286_v63, %v2033_v1  ;;  %v971_v63 = vld [vmem:[%s2225_s6 + $0x50] sm:$0xff] }
 0x18c   : > { %v1288_v62 = vpop.f32.mrf.mxu0 }
 0x18d   : > { %v1289_v0 = vadd.f32 %v1288_v62, %v1287_v61  ;;  %v788_v11 = vmax.f32 %v766_v6, 0.0  ;;  %v973_v61 = vld [vmem:[%s2225_s6 + $0x60] sm:$0xff]  ;;  %v972_v62 = vld [vmem:[%s2225_s6 + $0x58] sm:$0xff]  ;;  %v966_v6 = vld [vmem:[%s2225_s6 + $0x28] sm:$0xff] }
 0x18f   : > { %v771_v2 = vadd.f32 %v1289_v0, %v2033_v1  ;;  %v970_v0 = vld [vmem:[%s2225_s6 + $0x48] sm:$0xff]  ;;  %v969_v1 = vld [vmem:[%s2225_s6 + $0x40] sm:$0xff] }
 0x191   : > { %v789_v7 = vmax.f32 %v771_v2, 0.0  ;;  %v968_v2 = vld [vmem:[%s2225_s6 + $0x38] sm:$0xff] }
 0x193   : > { %1359 = vmatpush3.xpose.msra.mxu1 %v789_v7  ;;  %v965_v7 = vld [vmem:[%s2225_s6 + $0x20] sm:$0xff] }
 0x194   : > { %1360 = vmatprep.subr.mxu1 %v1606_v28 }
 0x197   : > { %1361 = vmatpush3.xpose.msra.mxu1 %v788_v11  ;;  %v962_v11 = vld [vmem:[%s2225_s6 + $0x8] sm:$0xff] }
 0x198   : > { %1362 = vmatprep.subr.mxu1 %v1606_v28 }
 0x19b   : > { %1363 = vmatpush3.xpose.msra.mxu1 %v787_v17  ;;  %v1063_v17 = vld [vmem:[%s2227_s8 + $0x70] sm:$0xff] }
 0x19c   : > { %1364 = vmatprep.subr.mxu1 %v1606_v28 }
 0x19f   : > { %1365 = vmatpush3.xpose.msra.mxu1 %v786_v23  ;;  %v1060_v23 = vld [vmem:[%s2227_s8 + $0x58] sm:$0xff] }
 0x1a0   : > { %1366 = vmatprep.subr.mxu1 %v1606_v28 }
 0x1a3   : > { %1367 = vmatpush3.xpose.msra.mxu1 %v785_v26  ;;  %v1057_v26 = vld [vmem:[%s2227_s8 + $0x40] sm:$0xff] }
 0x1a4   : > { %1368 = vmatprep.subr.mxu1 %v1606_v28 }
 0x1a7   : > { %1369 = vmatpush3.xpose.msra.mxu1 %v784_v19  ;;  %v1054_v19 = vld [vmem:[%s2227_s8 + $0x28] sm:$0xff] }
 0x1a8   : > { %1370 = vmatprep.subr.mxu1 %v1606_v28 }
 0x1ab   : > { %1371 = vmatpush3.xpose.msra.mxu1 %v783_v31  ;;  %v1052_v31 = vld [vmem:[%s2227_s8 + $0x18] sm:$0xff] }
 0x1ac   : > { %1372 = vmatprep.subr.mxu1 %v1606_v28 }
 0x1af   : > { %1373 = vmatpush3.xpose.msra.mxu1 %v782_v33 }
 0x1b0   : > { %1374 = vmatprep.subr.mxu1 %v1606_v28 }
 0x1b3   : > { %1375 = vmatpush3.xpose.msra.mxu1 %v781_v42 }
 0x1b4   : > { %1376 = vmatprep.subr.mxu1 %v1606_v28 }
 0x1b7   : > { %1377 = vmatpush3.xpose.msra.mxu1 %v780_v58 }
 0x1b8   : > { %1378 = vmatprep.subr.mxu1 %v1606_v28 }
 0x1bb   : > { %1379 = vmatpush3.xpose.msra.mxu1 %v779_v5  ;;  %v1051_v5 = vld [vmem:[%s2227_s8 + $0x10] sm:$0xff] }
 0x1bc   : > { %1380 = vmatprep.subr.mxu1 %v1606_v28 }
 0x1bf   : > { %1381 = vmatpush3.xpose.msra.mxu1 %v778_v32  ;;  %v1049_v32 = vld [vmem:[%s2227_s8] sm:$0xff] }
 0x1c0   : > { %1382 = vmatprep.subr.mxu1 %v1606_v28 }
 0x1c3   : > { %1383 = vmatpush3.xpose.msra.mxu1 %v777_v35 }
 0x1c4   : > { %1384 = vmatprep.subr.mxu1 %v1606_v28 }
 0x1c7   : > { %1385 = vmatpush3.xpose.msra.mxu1 %v776_v36 }
 0x1c8   : > { %1386 = vmatprep.subr.mxu1 %v1606_v28 }
 0x1cb   : > { %1387 = vmatpush3.xpose.msra.mxu1 %v775_v37  ;;  %v1065_v37 = vld [vmem:[#allocation3] sm:$0x1] }
 0x1cc   : > { %1388 = vmatprep.subr.mxu1 %v1606_v28 }
 0x1cf   : > { %1389 = vmatpush3.xpose.msra.mxu1 %v774_v38 }
 0x1d0   : > { %1428 = vmatprep.subr.mxu1 %v1606_v28 }
 0x1d2   : > { %1391 = vmatmul.mubr.f32.vlgmr.msra.gmra.mxu1 %v790_v49 }
 0x1d3   : > { %1460 = vmatprep.mubr.msk.f32.mxu1 %vm1607_vm1, %v1606_v28  ;;  %1429 = vmatpush3.msra.mxu1 %v976_v57 }
 0x1d4   : > { %1430 = vmatprep.subr.mxu1 %v1606_v28 }
 0x1d5   : > { %1431 = vmatpush3.msra.mxu1 %v975_v59 }
 0x1d6   : > { %1432 = vmatprep.subr.mxu1 %v1606_v28 }
 0x292   : > { %v867_v45 = vpop.f32.mrf.mxu1 }
 0x293   : > { %v868_v46 = vadd.f32 %v867_v45, %v800_v44 }
 0x294   : > { %v1392_v47 = vpop.f32.mrf.mxu1 }
 0x295   : > { %v874_v48 = vsel %vm873_vm2, %v868_v46, -1e+30 }
 0x296   : > { %v876_v50 = vsel %vm875_vm3, %v874_v48, -inf }
 0x297   : > { %877 = vmax.xlane.f32.xlu1 %v876_v50 }
 0x2a8   : > { %957 = vrot.lane.b32.xlu1 %v1711_v9, %s1605_s28  ;;  %v974_v9 = vld [vmem:[%s2225_s6 + $0x68] sm:$0xff] }
 0x2a9   : > { %1433 = vmatpush3.msra.mxu1 %v974_v9 }
 0x2aa   : > { %1434 = vmatprep.subr.mxu1 %v1606_v28 }
 0x2ab   : > { %1435 = vmatpush3.msra.mxu1 %v973_v61 }
 0x2ac   : > { %1436 = vmatprep.subr.mxu1 %v1606_v28 }
 0x2ad   : > { %1437 = vmatpush3.msra.mxu1 %v972_v62 }
 0x2ae   : > { %1438 = vmatprep.subr.mxu1 %v1606_v28 }
 0x2af   : > { %1439 = vmatpush3.msra.mxu1 %v971_v63 }
 0x2b0   : > { %1440 = vmatprep.subr.mxu1 %v1606_v28 }
 0x2b1   : > { %1441 = vmatpush3.msra.mxu1 %v970_v0 }
 0x2b2   : > { %1442 = vmatprep.subr.mxu1 %v1606_v28 }
 0x2b3   : > { %1443 = vmatpush3.msra.mxu1 %v969_v1 }
 0x2b4   : > { %1444 = vmatprep.subr.mxu1 %v1606_v28 }
 0x2b5   : > { %1445 = vmatpush3.msra.mxu1 %v968_v2 }
 0x2b6   : > { %1446 = vmatprep.subr.mxu1 %v1606_v28 }
 0x2b7   : > { %1447 = vmatpush3.msra.mxu1 %v967_v4 }
 0x2b8   : > { %1448 = vmatprep.subr.mxu1 %v1606_v28 }
 0x2b9   : > { %1449 = vmatpush3.msra.mxu1 %v966_v6 }
 0x2ba   : > { %1450 = vmatprep.subr.mxu1 %v1606_v28 }
 0x2bb   : > { %1451 = vmatpush3.msra.mxu1 %v965_v7 }
 0x2bc   : > { %1452 = vmatprep.subr.mxu1 %v1606_v28 }
 0x2bd   : > { %1453 = vmatpush3.msra.mxu1 %v964_v8 }
 0x2be   : > { %1454 = vmatprep.subr.mxu1 %v1606_v28 }
 0x2bf   : > { %1455 = vmatpush3.msra.mxu1 %v963_v10 }
 0x2c0   : > { %1456 = vmatprep.subr.mxu1 %v1606_v28 }
 0x2c1   : > { %1457 = vmatpush3.msra.mxu1 %v962_v11 }
 0x2c2   : > { %1458 = vmatprep.subr.mxu1 %v1606_v28 }
 0x2c3   : > { %1459 = vmatpush3.msra.mxu1 %v961_v15 }
 0x320   : > { %v878_v52 = vpop.xlane.xlu1 %877 }
 0x321   : > { %v879_v53 = vsub.f32 %v874_v48, %v878_v52 }
 0x323   : > { %v880_v54 = vmul.f32 1.442695, %v879_v53 }
 0x324   : > { %v958_v42 = vpop.permute.xlu1 %957 }
 0x325   : > { %1591 = vpow2.f32 %v880_v54 }
 0x332   : > { %v1592_v55 = vpop.eup %1591 }
 0x333   : > { %1426 = vmatmul.mubr.f32.vlgmr.msra.gmra.mxu0 %v1592_v55  ;;  %v882_v56 = vsel %vm875_vm3, %v1592_v55, 0.0 }
 0x334   : > { %883 = vadd.xlane.f32.xlu0 %v882_v56  ;;  %1495 = vmatprep.mubr.msk.f32.mxu0 %vm1607_vm1, %v1606_v28 }
 0x335   : > { %1464 = vmatpush3.msra.mxu0 %v1064_v16 }
 0x336   : > { %1465 = vmatprep.subr.mxu0 %v1606_v28 }
 0x337   : > { %1466 = vmatpush3.msra.mxu0 %v1063_v17 }
 0x338   : > { %1467 = vmatprep.subr.mxu0 %v1606_v28 }
 0x339   : > { %1468 = vmatpush3.msra.mxu0 %v1062_v20 }
 0x33a   : > { %1469 = vmatprep.subr.mxu0 %v1606_v28 }
 0x33b   : > { %1470 = vmatpush3.msra.mxu0 %v1061_v21 }
 0x33c   : > { %1471 = vmatprep.subr.mxu0 %v1606_v28 }
 0x33d   : > { %1472 = vmatpush3.msra.mxu0 %v1060_v23 }
 0x33e   : > { %1473 = vmatprep.subr.mxu0 %v1606_v28 }
 0x33f   : > { %1474 = vmatpush3.msra.mxu0 %v1059_v24 }
 0x340   : > { %1475 = vmatprep.subr.mxu0 %v1606_v28 }
 0x341   : > { %1476 = vmatpush3.msra.mxu0 %v1058_v25 }
 0x342   : > { %1477 = vmatprep.subr.mxu0 %v1606_v28 }
 0x343   : > { %1478 = vmatpush3.msra.mxu0 %v1057_v26 }
 0x344   : > { %1479 = vmatprep.subr.mxu0 %v1606_v28 }
 0x345   : > { %1480 = vmatpush3.msra.mxu0 %v1056_v27 }
 0x346   : > { %1481 = vmatprep.subr.mxu0 %v1606_v28 }
 0x347   : > { %1482 = vmatpush3.msra.mxu0 %v1055_v22 }
 0x348   : > { %1483 = vmatprep.subr.mxu0 %v1606_v28 }
 0x349   : > { %1484 = vmatpush3.msra.mxu0 %v1054_v19 }
 0x34a   : > { %1485 = vmatprep.subr.mxu0 %v1606_v28 }
 0x34b   : > { %1486 = vmatpush3.msra.mxu0 %v1053_v18 }
 0x34c   : > { %1487 = vmatprep.subr.mxu0 %v1606_v28 }
 0x34d   : > { %1488 = vmatpush3.msra.mxu0 %v1052_v31 }
 0x34e   : > { %1489 = vmatprep.subr.mxu0 %v1606_v28 }
 0x34f   : > { %1490 = vmatpush3.msra.mxu0 %v1051_v5 }
 0x350   : > { %1491 = vmatprep.subr.mxu0 %v1606_v28 }
 0x351   : > { %1492 = vmatpush3.msra.mxu0 %v1050_v30 }
 0x352   : > { %1493 = vmatprep.subr.mxu0 %v1606_v28 }
 0x353   : > { %1494 = vmatpush3.msra.mxu0 %v1049_v32 }
 0x3bd   : > { %v884_v13 = vpop.xlane.xlu0 %883 }
 0x3be   : > { %1593 = vrcp.f32 %v884_v13 }
 0x3cb   : > { %v1594_v33 = vpop.eup %1593 }
 0x3f3   : > { %v951_v41 = vpop.f32.mrf.mxu0 }
 0x3f4   : > { %v956_v51 = vmul.f32 %v1594_v33, %v951_v41 }
 0x3f5   : > { %v1427_v58 = vpop.f32.mrf.mxu0 }
 0x3f6   : > { %v960_v3 = vsel %vm557_vm0, %v956_v51, %v958_v42 }
 0x3f7   : > { %1461 = vmatmul.mubr.f32.vlgmr.msra.gmra.mxu1 %v960_v3 }
 0x4b7   : > { %v1044_v35 = vpop.f32.mrf.mxu1 }
 0x4b8   : > { %v1045_v29 = vadd.f32 %v1044_v35, %v977_v34 }
 0x4b9   : > { %v1462_v36 = vpop.f32.mrf.mxu1 }
 0x4ba   : > { %v1048_v60 = vmax.f32 %v1045_v29, 0.0 }
 0x4bc   : > { %1496 = vmatmul.mubr.f32.vlgmr.msra.gmra.mxu0 %v1048_v60 }
 0x57c   : > { %v1132_v38 = vpop.f32.mrf.mxu0 }
 0x57d   : > { %v1133_v49 = vadd.f32 %v1132_v38, %v1065_v37 }
 0x57e   : > { %v1497_v12 = vpop.f32.mrf.mxu0 }
 0x57f   : > { %v1136_v28 = vmul.f32 0.5, %v1133_v49 }
 0x581   : > { %1595 = vtanh.f32 %v1136_v28 }
 0x58e   : > { %v1596_v39 = vpop.eup %1595 }
 0x58f   : > { %v1138_v40 = vadd.f32 1.0, %v1596_v39 }
 0x591   : > { %v1139_v14 = vmul.f32 0.5, %v1138_v40 }
 0x593   : > { %1141 = vst.msk [vmem:[%s373_s23] sm:$0x1] %vm1140_vm4, %v1139_v14 }
 0x594 PF: > { %s24_s17 = sadd.s32 1, %s1603_s17  }
 0x595   : > { %p21_p4 = scmp.ge.s32.totalorder %s24_s17, 4  }
 0x597   :  { %23 = sbr.rel (!%p21_p4) target bundleno = 3 (0x3), region = 93 }

</bundles_post_ra>
